<compile_context>
chip_gen: v7x
topology: tpu7x:2x2x1
jax: 0.10.0
libtpu: 0.0.40
codegen_flags: <defaults>
</compile_context>

<pallas_src>
import jax
import jax.numpy as jnp
from jax.experimental import pallas as pl
from jax.experimental.pallas import tpu as pltpu


def _round_up(n, m):
    return ((n + m - 1) // m) * m


def fc_classifier_kernel(x_ref, w1_ref, b1_ref, w2_ref, b2_ref, w3_ref, b3_ref,
                         o_ref, h_ref):
    # x arrives in its HBM dtype (f32); cast to the MXU dtype in VMEM (VPU is idle).
    x = x_ref[...].astype(w1_ref.dtype)
    # fc1 (normalization already folded into w1/b1) + bias + ReLU; store bf16.
    h = jnp.dot(x, w1_ref[...], preferred_element_type=jnp.float32) + b1_ref[...]
    h_ref[...] = jnp.maximum(h, 0.0).astype(h_ref.dtype)
    # dropout: identity (eval mode)
    # fc2 + bias + ReLU; store bf16.
    h = jnp.dot(h_ref[...], w2_ref[...],
                preferred_element_type=jnp.float32) + b2_ref[...]
    h_ref[...] = jnp.maximum(h, 0.0).astype(h_ref.dtype)
    # dropout: identity (eval mode)
    # fc3 -> bf16 output (halved writeback bytes; logits precision is fine for argmax).
    o = jnp.dot(h_ref[...], w3_ref[...],
                preferred_element_type=jnp.float32) + b3_ref[...]
    o_ref[...] = o.astype(o_ref.dtype)


def prepare_params(mean, std, w1, b1, w2, b2, w3, b3, *, mxu_dtype=jnp.bfloat16):
    """One-time parameter transform (do NOT call per forward pass):
    fold normalization into fc1, zero-pad hidden/class dims to lane-dense
    multiples of 128, and cast matmul operands to the MXU dtype (biases stay f32).
    The input-feature dim D is intentionally NOT padded (x goes to the kernel
    un-padded and un-cast)."""
    D, H = w1.shape
    C = w3.shape[1]
    Hp, Cp = _round_up(H, 128), _round_up(C, 128)

    mean = mean.reshape(1, D).astype(jnp.float32)
    std = std.reshape(1, D).astype(jnp.float32)
    inv_std = 1.0 / std
    w1_eff = w1 * inv_std.reshape(D, 1)                 # diag(1/std) @ w1
    b1_eff = b1.reshape(1, H) - (mean * inv_std) @ w1   # b1 - (mean/std) @ w1

    def pad2(a, r, c):
        return jnp.pad(a, ((0, r - a.shape[0]), (0, c - a.shape[1])))

    params = dict(
        w1=pad2(w1_eff, D, Hp).astype(mxu_dtype),
        b1=pad2(b1_eff, 1, Hp).astype(jnp.float32),
        w2=pad2(w2, Hp, Hp).astype(mxu_dtype),
        b2=pad2(b2.reshape(1, H), 1, Hp).astype(jnp.float32),
        w3=pad2(w3, Hp, Cp).astype(mxu_dtype),
        b3=pad2(b3.reshape(1, C), 1, Cp).astype(jnp.float32),
    )
    dims = (D, H, C, Hp, Cp)
    return params, dims


def fc_classifier(x, params, dims, *, tb=2048, vmem_budget_bytes=30 << 20,
                  mxu_dtype=jnp.bfloat16):
    B, D = x.shape
    D0, H, C, Hp, Cp = dims
    assert D == D0, "input feature dim must match prepared params"

    # --- Batch-tile sizing from a VMEM budget (works on v5e/v6e 128 MiB and
    #     v7x 64 MiB): single-buffered weights + per-row pipelined buffers.
    w_bytes = 2 * (D * Hp + Hp * Hp + Hp * Cp) + 4 * (2 * Hp + Cp)
    per_row = 2 * D * 4 + 2 * Cp * 2 + Hp * 2   # 2x f32 x-buf + 2x bf16 out-buf + bf16 h
    fit = max((vmem_budget_bytes - w_bytes) // per_row, 16)
    B16 = _round_up(B, 16)                       # bf16 packed tile is (16, 128)
    TB = max(16, min(int(tb), int(fit), B16))
    TB -= TB % 16
    if B16 >= 32:                                # >=2 grid steps -> both v7x TCs busy
        TB = min(TB, 16 * ((B16 + 31) // 32))
    Bp = _round_up(B, TB)

    # Pad ONLY the batch axis, ONLY when needed; no feature pad, no dtype cast here
    # (the f32->bf16 cast happens inside the kernel).  Padded rows produce garbage
    # logits that are sliced off below -- do not reduce over the padded batch axis.
    xp = x if Bp == B else jnp.pad(x, ((0, Bp - B), (0, 0)))

    grid = (Bp // TB,)

    # Grid-invariant, single-buffered blocks -> weights/biases stay VMEM-resident.
    def resident(shape):
        return pl.BlockSpec(shape, lambda i: (0, 0), pipeline_mode=pl.Buffered(1))

    # Explicit scoped-VMEM limit: raises v5e's 16 MiB default, stays under v7x's
    # 64 MiB physical.
    vmem_estimate = w_bytes + TB * per_row + (2 << 20)
    vmem_limit = int(min(max(vmem_estimate, 16 << 20), 48 << 20))

    flops = 2 * Bp * (D * Hp + Hp * Hp + Hp * Cp)
    bytes_accessed = (Bp * D * 4                              # x (f32)
                      + 2 * (D * Hp + Hp * Hp + Hp * Cp)      # weights (bf16)
                      + 4 * (2 * Hp + Cp)                     # biases (f32)
                      + Bp * Cp * 2)                          # output (bf16)

    out = pl.pallas_call(
        fc_classifier_kernel,
        out_shape=jax.ShapeDtypeStruct((Bp, Cp), jnp.bfloat16),
        grid=grid,
        in_specs=[
            # x: pipelined over batch (default 2 buffers; sweep pl.Buffered(3) if
            # the DMA bubble at tile boundaries shows up and VMEM allows).
            pl.BlockSpec((TB, D), lambda i: (i, 0)),
            resident((D, Hp)), resident((1, Hp)),      # w1', b1'
            resident((Hp, Hp)), resident((1, Hp)),     # w2,  b2
            resident((Hp, Cp)), resident((1, Cp)),     # w3,  b3
        ],
        out_specs=pl.BlockSpec((TB, Cp), lambda i: (i, 0)),
        scratch_shapes=[pltpu.VMEM((TB, Hp), mxu_dtype)],   # bf16 hidden activations
        compiler_params=pltpu.CompilerParams(
            dimension_semantics=("parallel",),
            vmem_limit_bytes=vmem_limit),
        cost_estimate=pl.CostEstimate(
            flops=int(flops), transcendentals=0,
            bytes_accessed=int(bytes_accessed)),
    )(xp, params["w1"], params["b1"], params["w2"], params["b2"],
      params["w3"], params["b3"])

    # Slice off batch padding and the padded class columns; return f32 logits
    # (tiny cast on a (B, C) array).
    return out[:B, :C].astype(jnp.float32)


def init_params(key, input_dim, n_hidden, n_classes):
    """Deterministic synthetic params (PyTorch Linear-style uniform init)."""
    ks = jax.random.split(key, 8)

    def linear(kw, kb, fan_in, fan_out):
        bound = 1.0 / jnp.sqrt(fan_in)
        w = jax.random.uniform(kw, (fan_in, fan_out), jnp.float32, -bound, bound)
        b = jax.random.uniform(kb, (1, fan_out), jnp.float32, -bound, bound)
        return w, b

    # Synthetic normalization stats (stand-in for mean_x_train.npy / std_x_train.npy).
    mean = jax.random.normal(ks[0], (1, input_dim), jnp.float32)
    std = jnp.abs(jax.random.normal(ks[1], (1, input_dim), jnp.float32)) + 0.5

    w1, b1 = linear(ks[2], ks[3], input_dim, n_hidden)
    w2, b2 = linear(ks[4], ks[5], n_hidden, n_hidden)
    w3, b3 = linear(ks[6], ks[7], n_hidden, n_classes)
    return mean, std, w1, b1, w2, b2, w3, b3


if __name__ == "__main__":
    B, D, H, C = 8, 64, 32, 2   # batch, input_dim, n_hidden, n_classes
    key = jax.random.PRNGKey(0)
    kx, kp = jax.random.split(key)
    x = jax.random.normal(kx, (B, D), jnp.float32)
    mean, std, w1, b1, w2, b2, w3, b3 = init_params(kp, D, H, C)

    # One-time prep (fold normalization, pad, cast), then run the kernel.
    params, dims = prepare_params(mean, std, w1, b1, w2, b2, w3, b3)
    out = fc_classifier(x, params, dims)
    out = jax.block_until_ready(out)
    assert out.shape == (B, C)

    # Reference 1: exact module semantics in f32 (loose tolerance: bf16 MXU
    # operands + bf16 output rounding).
    xn = (x - mean) / std
    ref_f32 = jnp.maximum(xn @ w1 + b1, 0.0)
    ref_f32 = jnp.maximum(ref_f32 @ w2 + b2, 0.0)
    ref_f32 = ref_f32 @ w3 + b3
    assert jnp.allclose(out, ref_f32, atol=2.5e-1, rtol=5e-2)

    # Reference 2: plain-JAX recompute of the exact kernel arithmetic (folded
    # normalization, bf16 operands, f32 accumulation, bf16 hidden storage,
    # bf16 output) -> tight tolerance.
    def mm(a, w):
        return jnp.dot(a.astype(jnp.bfloat16), w.astype(jnp.bfloat16),
                       preferred_element_type=jnp.float32)
    inv_std = 1.0 / std
    w1_eff = w1 * inv_std.reshape(D, 1)
    b1_eff = b1 - (mean * inv_std) @ w1
    h = jnp.maximum(mm(x, w1_eff) + b1_eff, 0.0).astype(jnp.bfloat16)
    h = jnp.maximum(mm(h, w2) + b2, 0.0).astype(jnp.bfloat16)
    ref_bf16 = (mm(h, w3) + b3).astype(jnp.bfloat16).astype(jnp.float32)
    assert jnp.allclose(out, ref_bf16, atol=5e-3, rtol=5e-3)

    print("KERNEL_OK")
</pallas_src>

<mosaic_0001>
module attributes {stable_mosaic.version = 11 : i64} {
  func.func @fc_classifier_kernel(%arg0: i32, %arg1: memref<16x64xf32, #tpu.memory_space<vmem>>, %arg2: memref<64x128xbf16, #tpu.memory_space<vmem>>, %arg3: memref<1x128xf32, #tpu.memory_space<vmem>>, %arg4: memref<128x128xbf16, #tpu.memory_space<vmem>>, %arg5: memref<1x128xf32, #tpu.memory_space<vmem>>, %arg6: memref<128x128xbf16, #tpu.memory_space<vmem>>, %arg7: memref<1x128xf32, #tpu.memory_space<vmem>>, %arg8: memref<16x128xbf16, #tpu.memory_space<vmem>>, %arg9: memref<16x128xbf16, #tpu.memory_space<vmem>>) attributes {dimension_semantics = [#tpu.dimension_semantics<parallel>], iteration_bounds = array<i64: 1>, scalar_prefetch = 0 : i64, scratch_operands = 1 : i64, tpu.core_type = #tpu.core_type<tc>, window_params = [{transform_indices = @transform_0, window_bounds = array<i64: 16, 64>}, {pipeline_mode = #tpu.pipeline_mode<synchronous>, transform_indices = @transform_1, window_bounds = array<i64: 64, 128>}, {pipeline_mode = #tpu.pipeline_mode<synchronous>, transform_indices = @transform_2, window_bounds = array<i64: 1, 128>}, {pipeline_mode = #tpu.pipeline_mode<synchronous>, transform_indices = @transform_3, window_bounds = array<i64: 128, 128>}, {pipeline_mode = #tpu.pipeline_mode<synchronous>, transform_indices = @transform_4, window_bounds = array<i64: 1, 128>}, {pipeline_mode = #tpu.pipeline_mode<synchronous>, transform_indices = @transform_5, window_bounds = array<i64: 128, 128>}, {pipeline_mode = #tpu.pipeline_mode<synchronous>, transform_indices = @transform_6, window_bounds = array<i64: 1, 128>}, {transform_indices = @transform_7, window_bounds = array<i64: 16, 128>}]} {
    %c0 = arith.constant 0 : index
    %c0_0 = arith.constant 0 : index
    %0 = vector.load %arg1[%c0, %c0_0] : memref<16x64xf32, #tpu.memory_space<vmem>>, vector<16x64xf32>
    %1 = arith.truncf %0 : vector<16x64xf32> to vector<16x64xbf16>
    %c0_1 = arith.constant 0 : index
    %c0_2 = arith.constant 0 : index
    %2 = vector.load %arg2[%c0_1, %c0_2] : memref<64x128xbf16, #tpu.memory_space<vmem>>, vector<64x128xbf16>
    %cst = arith.constant dense<0.000000e+00> : vector<16x128xf32>
    %3 = tpu.matmul %1, %2, %cst {dimension_numbers = #tpu.dot_dimension_numbers<[1], [0], [0], [1], [0, 0, 1, 1], [], []>} : vector<16x64xbf16>, vector<64x128xbf16>, vector<16x128xf32> -> vector<16x128xf32>
    %c0_3 = arith.constant 0 : index
    %c0_4 = arith.constant 0 : index
    %4 = vector.load %arg3[%c0_3, %c0_4] : memref<1x128xf32, #tpu.memory_space<vmem>>, vector<1x128xf32>
    %5 = vector.broadcast %4 : vector<1x128xf32> to vector<16x128xf32>
    %6 = arith.addf %3, %5 : vector<16x128xf32>
    %cst_5 = arith.constant 0.000000e+00 : f32
    %7 = vector.broadcast %cst_5 : f32 to vector<16x128xf32>
    %8 = arith.maximumf %6, %7 : vector<16x128xf32>
    %9 = arith.truncf %8 : vector<16x128xf32> to vector<16x128xbf16>
    %c0_6 = arith.constant 0 : index
    %c0_7 = arith.constant 0 : index
    %10 = vector.load %arg9[%c0_6, %c0_7] : memref<16x128xbf16, #tpu.memory_space<vmem>>, vector<16x128xbf16>
    tpu.vector_store %arg9[%c0_6, %c0_7], %9 {strides = array<i32>} : memref<16x128xbf16, #tpu.memory_space<vmem>>, vector<16x128xbf16>,
    %c0_8 = arith.constant 0 : index
    %c0_9 = arith.constant 0 : index
    %11 = vector.load %arg9[%c0_8, %c0_9] : memref<16x128xbf16, #tpu.memory_space<vmem>>, vector<16x128xbf16>
    %c0_10 = arith.constant 0 : index
    %c0_11 = arith.constant 0 : index
    %12 = vector.load %arg4[%c0_10, %c0_11] : memref<128x128xbf16, #tpu.memory_space<vmem>>, vector<128x128xbf16>
    %cst_12 = arith.constant dense<0.000000e+00> : vector<16x128xf32>
    %13 = tpu.matmul %11, %12, %cst_12 {dimension_numbers = #tpu.dot_dimension_numbers<[1], [0], [0], [1], [0, 0, 1, 1], [], []>} : vector<16x128xbf16>, vector<128x128xbf16>, vector<16x128xf32> -> vector<16x128xf32>
    %c0_13 = arith.constant 0 : index
    %c0_14 = arith.constant 0 : index
    %14 = vector.load %arg5[%c0_13, %c0_14] : memref<1x128xf32, #tpu.memory_space<vmem>>, vector<1x128xf32>
    %15 = vector.broadcast %14 : vector<1x128xf32> to vector<16x128xf32>
    %16 = arith.addf %13, %15 : vector<16x128xf32>
    %cst_15 = arith.constant 0.000000e+00 : f32
    %17 = vector.broadcast %cst_15 : f32 to vector<16x128xf32>
    %18 = arith.maximumf %16, %17 : vector<16x128xf32>
    %19 = arith.truncf %18 : vector<16x128xf32> to vector<16x128xbf16>
    %c0_16 = arith.constant 0 : index
    %c0_17 = arith.constant 0 : index
    %20 = vector.load %arg9[%c0_16, %c0_17] : memref<16x128xbf16, #tpu.memory_space<vmem>>, vector<16x128xbf16>
    tpu.vector_store %arg9[%c0_16, %c0_17], %19 {strides = array<i32>} : memref<16x128xbf16, #tpu.memory_space<vmem>>, vector<16x128xbf16>,
    %c0_18 = arith.constant 0 : index
    %c0_19 = arith.constant 0 : index
    %21 = vector.load %arg9[%c0_18, %c0_19] : memref<16x128xbf16, #tpu.memory_space<vmem>>, vector<16x128xbf16>
    %c0_20 = arith.constant 0 : index
    %c0_21 = arith.constant 0 : index
    %22 = vector.load %arg6[%c0_20, %c0_21] : memref<128x128xbf16, #tpu.memory_space<vmem>>, vector<128x128xbf16>
    %cst_22 = arith.constant dense<0.000000e+00> : vector<16x128xf32>
    %23 = tpu.matmul %21, %22, %cst_22 {dimension_numbers = #tpu.dot_dimension_numbers<[1], [0], [0], [1], [0, 0, 1, 1], [], []>} : vector<16x128xbf16>, vector<128x128xbf16>, vector<16x128xf32> -> vector<16x128xf32>
    %c0_23 = arith.constant 0 : index
    %c0_24 = arith.constant 0 : index
    %24 = vector.load %arg7[%c0_23, %c0_24] : memref<1x128xf32, #tpu.memory_space<vmem>>, vector<1x128xf32>
    %25 = vector.broadcast %24 : vector<1x128xf32> to vector<16x128xf32>
    %26 = arith.addf %23, %25 : vector<16x128xf32>
    %27 = arith.truncf %26 : vector<16x128xf32> to vector<16x128xbf16>
    %c0_25 = arith.constant 0 : index
    %c0_26 = arith.constant 0 : index
    %28 = vector.load %arg8[%c0_25, %c0_26] : memref<16x128xbf16, #tpu.memory_space<vmem>>, vector<16x128xbf16>
    tpu.vector_store %arg8[%c0_25, %c0_26], %27 {strides = array<i32>} : memref<16x128xbf16, #tpu.memory_space<vmem>>, vector<16x128xbf16>,
    return
  }
  func.func @transform_0(%arg0: i32) -> (i32, i32) {
    %c0_i32 = arith.constant 0 : i32
    %c0_i32_0 = arith.constant 0 : i32
    return %arg0, %c0_i32 : i32, i32
  }
  func.func @transform_1(%arg0: i32) -> (i32, i32) {
    %c0_i32 = arith.constant 0 : i32
    %c0_i32_0 = arith.constant 0 : i32
    %c0_i32_1 = arith.constant 0 : i32
    return %c0_i32, %c0_i32_0 : i32, i32
  }
  func.func @transform_2(%arg0: i32) -> (i32, i32) {
    %c0_i32 = arith.constant 0 : i32
    %c0_i32_0 = arith.constant 0 : i32
    %c0_i32_1 = arith.constant 0 : i32
    return %c0_i32, %c0_i32_0 : i32, i32
  }
  func.func @transform_3(%arg0: i32) -> (i32, i32) {
    %c0_i32 = arith.constant 0 : i32
    %c0_i32_0 = arith.constant 0 : i32
    %c0_i32_1 = arith.constant 0 : i32
    return %c0_i32, %c0_i32_0 : i32, i32
  }
  func.func @transform_4(%arg0: i32) -> (i32, i32) {
    %c0_i32 = arith.constant 0 : i32
    %c0_i32_0 = arith.constant 0 : i32
    %c0_i32_1 = arith.constant 0 : i32
    return %c0_i32, %c0_i32_0 : i32, i32
  }
  func.func @transform_5(%arg0: i32) -> (i32, i32) {
    %c0_i32 = arith.constant 0 : i32
    %c0_i32_0 = arith.constant 0 : i32
    %c0_i32_1 = arith.constant 0 : i32
    return %c0_i32, %c0_i32_0 : i32, i32
  }
  func.func @transform_6(%arg0: i32) -> (i32, i32) {
    %c0_i32 = arith.constant 0 : i32
    %c0_i32_0 = arith.constant 0 : i32
    %c0_i32_1 = arith.constant 0 : i32
    return %c0_i32, %c0_i32_0 : i32, i32
  }
  func.func @transform_7(%arg0: i32) -> (i32, i32) {
    %c0_i32 = arith.constant 0 : i32
    %c0_i32_0 = arith.constant 0 : i32
    return %arg0, %c0_i32 : i32, i32
  }
}

</mosaic_0001>

<bundles_post_ra>
// kernel: tpu_custom_call.1
= control target key start
LH: loop header
LB: loop body
LE: loop exit
PB: predicated region body
PF: predicated region fallthrough
CT: control target
= control target key end

     0   :  { %12 = vsyncpa [#allocation4], 0  ;;  %s855_s0 = inlined_call_operand.hbm [shape: f32[16,64], index: 0, kind: input, shape index: {}]   ;;  %s856_s1 = inlined_call_operand.hbm [shape: bf16[64,128], index: 1, kind: input, shape index: {}]   ;;  %s857_s2 = inlined_call_operand.vmem [shape: f32[1,128], index: 2, kind: input, shape index: {}]   ;;  %s858_s3 = inlined_call_operand.hbm [shape: bf16[128,128], index: 3, kind: input, shape index: {}]   ;;  %s859_s4 = inlined_call_operand.vmem [shape: f32[1,128], index: 4, kind: input, shape index: {}]   ;;  %s860_s5 = inlined_call_operand.hbm [shape: bf16[128,128], index: 5, kind: input, shape index: {}]   ;;  %s861_s6 = inlined_call_operand.vmem [shape: f32[1,128], index: 6, kind: input, shape index: {}]   ;;  %s862_s7 = inlined_call_operand.hbm [shape: bf16[16,128], index: 7, kind: output, shape index: {}]  }
   0x1   :  { %13 = vsyncpa [#allocation7], 0 }
   0x2   :  { %14 = vsyncpa [#allocation10], 0 }
   0x3   :  { %15 = vsyncpa [#allocation5], 0  ;;  %s690_s24 = smov [#allocation6]   ;;  %s572_s28 = scalar_lea.hbm %s856_s1, 512 }
   0x4   :  { %s33_s25 = sshll.u32 %s690_s24, 4  ;;  %p573_p0 = scmp.ne.s32.totalorder %s856_s1, %s572_s28  ;;  %s34_s25 = int_to_ptr.vmem [resolvable:$true] %s33_s25 }
   0x5   :  { %p576_p1 = scmp.lt.u32.totalorder %s572_s28, %s856_s1 }
   0x7   :  { %p578_p2 = pnand %p576_p1, %p573_p0 }
   0x9   :  { %581 = shalt.err (!%p578_p2)
}
   0xa   :  { %s582_s10 = scalar_lea.vmem %s34_s25, 512  ;;  %p587_p4 = scmp.lt.s32.totalorder %s34_s25, %s34_s25 }
   0xb   :  { %p583_p3 = scmp.ne.s32.totalorder %s34_s25, %s582_s10  ;;  %p588_p5 = scmp.lt.s32.totalorder %s582_s10, %s582_s10 }
   0xd   :  { %p589_p6 = por %p588_p5, %p587_p4 }
   0xf   :  { %p590_p7 = pnand %p589_p6, %p583_p3 }
  0x11   :  { %593 = shalt.err (!%p590_p7)
}
  0x12   :  { %s691_s11 = smov 64   ;;  %s692_s12 = smov 4  }
  0x13   :  { %39 = dma.hbm_to_vmem [thread:$0]  %s856_s1, 512, %s34_s25, [#allocation7], %s691_s11, %s691_s11, %s692_s12  }
  0x14   :  { %s693_s15 = smov [#allocation3]   ;;  %s594_s19 = scalar_lea.hbm %s855_s0, 256 }
  0x15   :  { %s21_s16 = sshll.u32 %s693_s15, 4  ;;  %p595_p8 = scmp.ne.s32.totalorder %s855_s0, %s594_s19  ;;  %s22_s16 = int_to_ptr.vmem [resolvable:$true] %s21_s16 }
  0x16   :  { %p598_p9 = scmp.lt.u32.totalorder %s594_s19, %s855_s0 }
  0x18   :  { %p600_p10 = pnand %p598_p9, %p595_p8 }
  0x1a   :  { %603 = shalt.err (!%p600_p10)
}
  0x1b   :  { %s604_s24 = scalar_lea.vmem %s22_s16, 256  ;;  %p609_p12 = scmp.lt.s32.totalorder %s22_s16, %s22_s16 }
  0x1c   :  { %p605_p11 = scmp.ne.s32.totalorder %s22_s16, %s604_s24  ;;  %p610_p13 = scmp.lt.s32.totalorder %s604_s24, %s604_s24 }
  0x1e   :  { %p611_p0 = por %p610_p13, %p609_p12 }
  0x20   :  { %p612_p1 = pnand %p611_p0, %p605_p11 }
  0x22   :  { %615 = shalt.err (!%p612_p1)
}
  0x23   :  { %s694_s1 = smov 128   ;;  %s695_s25 = smov 8  }
  0x24   :  { %27 = dma.hbm_to_vmem [thread:$0]  %s855_s0, 256, %s22_s16, [#allocation4], %s694_s1, %s694_s1, %s695_s25  }
  0x25   :  { %s696_s28 = smov [#allocation8]   ;;  %s697_s30 = smov [#allocation9]  }
  0x26   :  { %s47_s29 = sshll.u32 %s696_s28, 4  ;;  %s61_s8 = sshll.u32 %s697_s30, 4  ;;  %s48_s29 = int_to_ptr.vmem [resolvable:$true] %s47_s29  ;;  %s768_s8 = int_to_ptr.vmem [resolvable:$true] %s61_s8 }
  0x27   :  { %s616_s13 = scalar_lea.hbm %s858_s3, 1024 }
  0x28   :  { %p617_p2 = scmp.ne.s32.totalorder %s858_s3, %s616_s13  ;;  %p620_p3 = scmp.lt.u32.totalorder %s616_s13, %s858_s3 }
  0x2a   :  { %p622_p4 = pnand %p620_p3, %p617_p2 }
  0x2c   :  { %625 = shalt.err (!%p622_p4)
}
  0x2d   :  { %s626_s0 = scalar_lea.vmem %s48_s29, 1024  ;;  %p631_p6 = scmp.lt.s32.totalorder %s48_s29, %s48_s29 }
  0x2e   :  { %p627_p5 = scmp.ne.s32.totalorder %s48_s29, %s626_s0  ;;  %p632_p7 = scmp.lt.s32.totalorder %s626_s0, %s626_s0 }
  0x30   :  { %p633_p8 = por %p632_p7, %p631_p6 }
  0x32   :  { %p634_p9 = pnand %p633_p8, %p627_p5 }
  0x34   :  { %637 = shalt.err (!%p634_p9)
}
  0x35   :  { %53 = dma.hbm_to_vmem [thread:$0]  %s858_s3, 1024, %s48_s29, [#allocation7], %s691_s11, %s691_s11, %s692_s12  }
  0x36   :  { %s638_s22 = scalar_lea.hbm %s860_s5, 1024 }
  0x37   :  { %p639_p10 = scmp.ne.s32.totalorder %s860_s5, %s638_s22  ;;  %p642_p11 = scmp.lt.u32.totalorder %s638_s22, %s860_s5 }
  0x39   :  { %p644_p12 = pnand %p642_p11, %p639_p10 }
  0x3b   :  { %647 = shalt.err (!%p644_p12)
}
  0x3c   :  { %s648_s26 = scalar_lea.vmem %s768_s8, 1024  ;;  %p653_p0 = scmp.lt.s32.totalorder %s768_s8, %s768_s8 }
  0x3d   :  { %p649_p13 = scmp.ne.s32.totalorder %s768_s8, %s648_s26  ;;  %p654_p1 = scmp.lt.s32.totalorder %s648_s26, %s648_s26 }
  0x3f   :  { %p655_p2 = por %p654_p1, %p653_p0 }
  0x41   :  { %p656_p3 = pnand %p655_p2, %p649_p13 }
  0x43   :  { %659 = shalt.err (!%p656_p3)
}
  0x44   :  { %67 = dma.hbm_to_vmem [thread:$0]  %s860_s5, 1024, %s768_s8, [#allocation10], %s691_s11, %s691_s11, %s692_s12  }
  0x45   :  { %682 = dma.done.wait [#allocation4], 256  }
  0x46   :  { %683 = vsyncadd [#allocation4], 4294967040 }
  0x47   :  { %684 = dma.done.wait [#allocation7], 1536  }
  0x48   :  { %685 = vsyncadd [#allocation7], 4294965760 }
  0x49   :  { %686 = dma.done.wait [#allocation10], 1024  }
  0x4a   :  { %687 = vsyncadd [#allocation10], 4294966272  ;;  %v698_v0 = vmov 0.0   ;;  %vm699_vm0 = vmmov 0   ;;  %v552_v1 = vld [vmem:[#allocation6] sm:$0xff]   ;;  %v553_v2 = vld [vmem:[#allocation6 + $0x8] sm:$0xff]  }
  0x4b   :  { %489 = vmatprep.subr.bf16.mxu0 %v698_v0  ;;  %497 = vmatprep.mubr.msk.bf16.mxu0 %vm699_vm0, %v698_v0  ;;  %v556_v3 = vld [vmem:[#allocation8] sm:$0xff]   ;;  %v554_v4 = vld [vmem:[#allocation6 + $0x10] sm:$0xff]   ;;  %v557_v5 = vld [vmem:[#allocation8 + $0x8] sm:$0xff]   ;;  %vm125_vm1 = vcmask 523264   ;;  %s700_s9 = smov [#allocation11]  }
  0x4c   :  { %501 = vmatprep.subr.bf16.mxu1 %v698_v0  ;;  %517 = vmatprep.mubr.msk.bf16.mxu1 %vm699_vm0, %v698_v0  ;;  %v555_v6 = vld [vmem:[#allocation6 + $0x18] sm:$0xff]   ;;  %v83_v7 = vld [vmem:[#allocation3] sm:$0xff]  ;;  %v560_v12 = vld [vmem:[#allocation8 + $0x20] sm:$0xff]   ;;  %s419_s10 = sshll.u32 %s700_s9, 4  ;;  %s420_s10 = int_to_ptr.vmem [resolvable:$true] %s419_s10 }
  0x4d   :  { %490 = vmatpush3.bf16.msra.mxu0 %v552_v1  ;;  %502 = vmatpush3.bf16.msra.mxu1 %v556_v3  ;;  %v84_v8 = vld [vmem:[#allocation3 + $0x8] sm:$0xff]  ;;  %v558_v9 = vld [vmem:[#allocation8 + $0x10] sm:$0xff]   ;;  %v561_v13 = vld [vmem:[#allocation8 + $0x28] sm:$0xff]   ;;  %p665_p5 = scmp.lt.s32.totalorder %s420_s10, %s420_s10 }
  0x4e   :  { %491 = vmatprep.subr.bf16.mxu0 %v698_v0  ;;  %503 = vmatprep.subr.bf16.mxu1 %v698_v0  ;;  %v85_v10 = vpack.c.bf16 %v84_v8, %v83_v7  ;;  %v559_v11 = vld [vmem:[#allocation8 + $0x18] sm:$0xff]   ;;  %v562_v14 = vld [vmem:[#allocation8 + $0x30] sm:$0xff]   ;;  %v564_v16 = vld [vmem:[#allocation9] sm:$0xff]  }
  0x4f   :  { %v563_v15 = vld [vmem:[#allocation8 + $0x38] sm:$0xff]   ;;  %v565_v17 = vld [vmem:[#allocation9 + $0x8] sm:$0xff]   ;;  %v566_v18 = vld [vmem:[#allocation9 + $0x10] sm:$0xff]  }
  0x50   :  { %v567_v19 = vld [vmem:[#allocation9 + $0x18] sm:$0xff]   ;;  %v568_v20 = vld [vmem:[#allocation9 + $0x20] sm:$0xff]   ;;  %v569_v21 = vld [vmem:[#allocation9 + $0x28] sm:$0xff]  }
  0x51   :  { %492 = vmatpush3.bf16.msra.mxu0 %v553_v2  ;;  %504 = vmatpush3.bf16.msra.mxu1 %v557_v5  ;;  %v433_v22 = vld [vmem:[%s857_s2] ss:$0 sm:$0xff]  ;;  %v571_v33 = vld [vmem:[#allocation9 + $0x38] sm:$0xff]  }
  0x52   :  { %493 = vmatprep.subr.bf16.mxu0 %v698_v0  ;;  %505 = vmatprep.subr.bf16.mxu1 %v698_v0  ;;  %v570_v32 = vld [vmem:[#allocation9 + $0x30] sm:$0xff]  }
  0x53   :  { %v439_v34 = vld [vmem:[%s859_s4] ss:$0 sm:$0xff]  ;;  %s660_s4 = scalar_lea.vmem %s420_s10, 128 }
  0x54   :  { %v448_v44 = vld [vmem:[%s861_s6] ss:$0 sm:$0xff]  ;;  %p661_p4 = scmp.ne.s32.totalorder %s420_s10, %s660_s4  ;;  %p666_p6 = scmp.lt.s32.totalorder %s660_s4, %s660_s4 }
  0x55   :  { %494 = vmatpush3.bf16.msra.mxu0 %v554_v4  ;;  %506 = vmatpush3.bf16.msra.mxu1 %v558_v9 }
  0x56   :  { %495 = vmatprep.subr.bf16.mxu0 %v698_v0  ;;  %507 = vmatprep.subr.bf16.mxu1 %v698_v0  ;;  %p667_p7 = por %p666_p6, %p665_p5 }
  0x58   :  { %p668_p8 = pnand %p667_p7, %p661_p4 }
  0x59   :  { %496 = vmatpush3.bf16.msra.mxu0 %v555_v6  ;;  %508 = vmatpush3.bf16.msra.mxu1 %v559_v11 }
  0x5a   :  { %521 = vmatprep.subr.bf16.mxu0 %v698_v0  ;;  %509 = vmatprep.subr.bf16.mxu1 %v698_v0 }
  0x5c   :  { %498 = vmatmul.mubr.msk.bf16.vlgmr.msra.gmra.mrb[0].mxu0 %vm125_vm1, %v85_v10 }
  0x5d   :  { %537 = vmatprep.mubr.msk.bf16.mxu0 %vm699_vm0, %v698_v0  ;;  %510 = vmatpush3.bf16.msra.mxu1 %v560_v12 }
  0x5e   :  { %511 = vmatprep.subr.bf16.mxu1 %v698_v0  ;;  %522 = vmatpush3.bf16.msra.mxu0 %v564_v16 }
  0x5f   :  { %523 = vmatprep.subr.bf16.mxu0 %v698_v0 }
  0x61   :  { %512 = vmatpush3.bf16.msra.mxu1 %v561_v13 }
  0x62   :  { %513 = vmatprep.subr.bf16.mxu1 %v698_v0  ;;  %524 = vmatpush3.bf16.msra.mxu0 %v565_v17 }
  0x63   :  { %525 = vmatprep.subr.bf16.mxu0 %v698_v0 }
  0x65   :  { %514 = vmatpush3.bf16.msra.mxu1 %v562_v14 }
  0x66   :  { %515 = vmatprep.subr.bf16.mxu1 %v698_v0  ;;  %526 = vmatpush3.bf16.msra.mxu0 %v566_v18 }
  0x67   :  { %527 = vmatprep.subr.bf16.mxu0 %v698_v0 }
  0x69   :  { %516 = vmatpush3.bf16.msra.mxu1 %v563_v15 }
  0x6a   :  { %528 = vmatpush3.bf16.msra.mxu0 %v567_v19 }
  0x6b   :  { %529 = vmatprep.subr.bf16.mxu0 %v698_v0 }
  0x6e   :  { %530 = vmatpush3.bf16.msra.mxu0 %v568_v20 }
  0x6f   :  { %531 = vmatprep.subr.bf16.mxu0 %v698_v0 }
  0x72   :  { %532 = vmatpush3.bf16.msra.mxu0 %v569_v21 }
  0x73   :  { %533 = vmatprep.subr.bf16.mxu0 %v698_v0 }
  0x76   :  { %534 = vmatpush3.bf16.msra.mxu0 %v570_v32 }
  0x77   :  { %535 = vmatprep.subr.bf16.mxu0 %v698_v0 }
  0x7a   :  { %536 = vmatpush3.bf16.msra.mxu0 %v571_v33 }
 0x12f   :  { %v163_v23 = vpop.f32.mrb[0].mxu0 }
 0x130   :  { %v164_v24 = vadd.f32 %v433_v22, %v163_v23  ;;  %v499_v25 = vpop.f32.mrb[1].mxu0 }
 0x131   :  { %v166_v26 = vpop.f32.mrb[2].mxu0 }
 0x132   :  { %v167_v27 = vadd.f32 %v433_v22, %v166_v26  ;;  %v500_v28 = vpop.f32.mrb[3].mxu0  ;;  %v170_v29 = vmax.f32 %v164_v24, 0.0 }
 0x134   :  { %v171_v30 = vmax.f32 %v167_v27, 0.0 }
 0x136   :  { %v172_v31 = vpack.c.bf16 %v171_v30, %v170_v29 }
 0x138   :  { %518 = vmatmul.mubr.bf16.vlgmr.msra.gmra.mrb[0].mxu1 %v172_v31 }
 0x20b   :  { %v280_v35 = vpop.f32.mrb[0].mxu1 }
 0x20c   :  { %v281_v36 = vadd.f32 %v439_v34, %v280_v35  ;;  %v519_v37 = vpop.f32.mrb[1].mxu1 }
 0x20d   :  { %v283_v38 = vpop.f32.mrb[2].mxu1 }
 0x20e   :  { %v284_v39 = vadd.f32 %v439_v34, %v283_v38  ;;  %v520_v40 = vpop.f32.mrb[3].mxu1  ;;  %v287_v41 = vmax.f32 %v281_v36, 0.0 }
 0x210   :  { %v288_v42 = vmax.f32 %v284_v39, 0.0 }
 0x212   :  { %v289_v43 = vpack.c.bf16 %v288_v42, %v287_v41 }
 0x214   :  { %538 = vmatmul.mubr.bf16.vlgmr.msra.gmra.mrb[4].mxu0 %v289_v43 }
 0x2e7   :  { %v397_v45 = vpop.f32.mrb[4].mxu0 }
 0x2e8   :  { %v539_v46 = vpop.f32.mrb[5].mxu0  ;;  %v398_v48 = vadd.f32 %v448_v44, %v397_v45 }
 0x2e9   :  { %v400_v47 = vpop.f32.mrb[6].mxu0 }
 0x2ea   :  { %v401_v49 = vadd.f32 %v448_v44, %v400_v47  ;;  %v540_v50 = vpop.f32.mrb[7].mxu0 }
 0x2ec   :  { %v464_v51 = vpack.c.bf16 %v401_v49, %v398_v48 }
 0x2ee   :  { %465 = vst [vmem:[#allocation11] sm:$0xff] %v464_v51  }
 0x2ef   :  { %671 = shalt.err (!%p668_p8)
}
 0x2f0   :  { %s672_s14 = scalar_lea.hbm %s862_s7, 128 }
 0x2f1   :  { %p673_p9 = scmp.ne.s32.totalorder %s862_s7, %s672_s14  ;;  %p676_p10 = scmp.lt.u32.totalorder %s672_s14, %s862_s7 }
 0x2f3   :  { %p678_p11 = pnand %p676_p10, %p673_p9 }
 0x2f5   :  { %681 = shalt.err (!%p678_p11)
}
 0x2f6   :  { %425 = dma.vmem_to_hbm [thread:$0]  %s420_s10, 128, %s862_s7, [#allocation5], %s691_s11, %s691_s11, %s692_s12  }
 0x2f7   :  { %688 = dma.done.wait [#allocation5], 128  }
 0x2f8   :  { %689 = vsyncadd [#allocation5], 4294967168 }
 0x2f9   :  { %429 = vsyncpa [#allocation4], 1 }
 0x2fa   :  { %430 = vsyncpa [#allocation7], 1 }
 0x2fb   :  { %431 = vsyncpa [#allocation10], 1 }
 0x2fc   :  { %432 = vsyncpa [#allocation5], 1 }

</bundles_post_ra>
